<compile_context>
chip_gen: v5e
topology: v5e:2x2
jax: 0.10.0
libtpu: 0.0.40
codegen_flags: <defaults>
</compile_context>

<pallas_src>
import functools

import jax
import jax.numpy as jnp
from jax import lax
from jax.experimental import pallas as pl
from jax.experimental.pallas import tpu as pltpu


def _attn_kernel(xq_ref, xkv_ref, wq_ref, wkv_ref, o_ref, kv_scratch,
                 *, n_heads, scale):
    # xq_ref:     (1, Tq, C)  query rows of this (batch, q-tile) grid step
    # xkv_ref:    (1, T,  C)  full sequence of this batch element (block index
    #                         ignores qi -> stays resident across q tiles)
    # wq_ref:     (C, C)      Q projection weight, laid out so x @ wq == q(x)
    # wkv_ref:    (C, 2C)     fused [K | V] projection weight
    # o_ref:      (1, Tq, C)  lane-dense output block
    # kv_scratch: (T, 2C)     persistent K/V projections for the current batch
    md = wq_ref.dtype                       # matmul operand dtype (bf16 for MXU peak)
    qi = pl.program_id(1)

    # K/V projection once per batch element; later q tiles reuse the scratch.
    @pl.when(qi == 0)
    def _():
        kv = jnp.dot(xkv_ref[0].astype(md), wkv_ref[...],
                     preferred_element_type=jnp.float32)          # (T, 2C), f32 acc
        kv_scratch[...] = kv.astype(kv_scratch.dtype)

    x_q = xq_ref[0]                                               # (Tq, C)
    Tq, C = x_q.shape
    Hs = C // n_heads

    # Q projection for this tile; fold the softmax scale into q (Tq*C elements
    # instead of n_heads*Tq*T score elements).
    q = jnp.dot(x_q.astype(md), wq_ref[...],
                preferred_element_type=jnp.float32)               # (Tq, C) f32
    q = (q * jnp.float32(scale)).astype(md)

    kv = kv_scratch[...]                                          # (T, 2C) md
    T = kv.shape[0]
    k = kv[:, :C]
    v = kv[:, C:]

    # Causal mask: bool select, no (T,T) f32 bias buffer.  Rows are global.
    row = lax.broadcasted_iota(jnp.int32, (Tq, T), 0) + qi * Tq
    col = lax.broadcasted_iota(jnp.int32, (Tq, T), 1)
    masked = col > row

    for h in range(n_heads):                # static unroll; each head's
        qh = q[:, h * Hs:(h + 1) * Hs]      # intermediates die at its store
        kh = k[:, h * Hs:(h + 1) * Hs]
        vh = v[:, h * Hs:(h + 1) * Hs]

        # q @ k^T without materializing k.T (contract last dims of both);
        # bf16-capable MXU operands, f32 accumulation.
        s = lax.dot_general(qh, kh, (((1,), (1,)), ((), ())),
                            preferred_element_type=jnp.float32)   # (Tq, T)
        s = jnp.where(masked, jnp.float32(-1e30), s)

        m = jnp.max(s, axis=-1, keepdims=True)                    # f32 softmax math
        p = jnp.exp(s - m)
        denom = jnp.sum(p, axis=-1, keepdims=True)

        o_h = jnp.dot(p.astype(md), vh, preferred_element_type=jnp.float32)
        # Deferred, exact normalization: scales (Tq, Hs), not (Tq, T).
        o_h = o_h * pl.reciprocal(denom, approx=False)

        # Direct per-head store into the output block (no concatenate relayout).
        o_ref[0, :, h * Hs:(h + 1) * Hs] = o_h.astype(o_ref.dtype)


def prepare_attention_weights(wq, wk, wv, matmul_dtype=None):
    """Fold the nn.Linear weights ((out, in) layout) into matmul-ready layout
    ONCE at weight-load time (not per forward call).  Pass
    matmul_dtype=jnp.bfloat16 on v6e/v7x for MXU peak; accumulation and all
    softmax math stay f32 inside the kernel."""
    dtype = matmul_dtype if matmul_dtype is not None else wq.dtype
    w_q = wq.T.astype(dtype)                                      # (C, C)
    w_kv = jnp.concatenate([wk.T, wv.T], axis=1).astype(dtype)    # (C, 2C)
    return w_q, w_kv


def attention_heads_forward(x, w_q, w_kv, n_heads, *, q_tile=None):
    """x: (B, T, C); (w_q, w_kv) from prepare_attention_weights()."""
    B, T, C = x.shape
    assert C % n_heads == 0
    Hs = C // n_heads
    scale = float(Hs ** (-0.5))

    if q_tile is None:
        q_tile = T if T <= 512 else 256
    if T % q_tile != 0 or q_tile % 8 != 0:
        q_tile = T   # TODO(synk): ragged / padded q tiles for awkward T.
    nq = T // q_tile

    kernel = functools.partial(_attn_kernel, n_heads=n_heads, scale=scale)

    return pl.pallas_call(
        kernel,
        out_shape=jax.ShapeDtypeStruct((B, T, C), x.dtype),
        grid_spec=pltpu.PrefetchScalarGridSpec(
            num_scalar_prefetch=0,
            grid=(B, nq),
            in_specs=[
                pl.BlockSpec((1, q_tile, C), lambda b, qi: (b, qi, 0)),  # q rows
                pl.BlockSpec((1, T, C), lambda b, qi: (b, 0, 0)),        # full seq,
                #   constant block index across qi -> resident, re-DMA'd per b only.
                # Resident weights (constant index maps).  TODO(synk): mark them
                # pipeline_mode=pl.Buffered(1) to drop the second weight buffer on
                # VMEM-tight chips (v7x 64 MiB physical / v5e 16 MiB scoped default).
                pl.BlockSpec((C, C), lambda b, qi: (0, 0)),
                pl.BlockSpec((C, 2 * C), lambda b, qi: (0, 0)),
            ],
            out_specs=pl.BlockSpec((1, q_tile, C), lambda b, qi: (b, qi, 0)),
            scratch_shapes=[pltpu.VMEM((T, 2 * C), w_kv.dtype)],
        ),
        compiler_params=pltpu.CompilerParams(
            # Batch axis feeds the v7x megacore; the q-tile axis must stay
            # "arbitrary" because later tiles reuse the K/V scratch written at
            # qi == 0.  TODO(synk): for B == 1 serving on v7x, recompute K/V per
            # tile (or split the projection into its own kernel) so the q-tile
            # axis can also be "parallel".
            dimension_semantics=("parallel", "arbitrary"),
            vmem_limit_bytes=64 * 1024 * 1024,
        ),
    )(x, x, w_q, w_kv)


def _reference_forward(x, wq, wk, wv, n_heads):
    """Pure-JAX port of AttentionHeads.forward (eval mode)."""
    B, T, C = x.shape
    Hs = C // n_heads
    scale = Hs ** (-0.5)

    def proj(w):
        y = x @ w.T
        return jnp.transpose(y.reshape(B, T, n_heads, Hs), (0, 2, 1, 3))

    q, k, v = proj(wq), proj(wk), proj(wv)
    attn = jnp.einsum("bhtd,bhsd->bhts", q, k)
    mask = ~jnp.tril(jnp.ones((T, T), dtype=bool))
    attn = jnp.where(mask[None, None], -jnp.inf, attn) * scale
    attn = jax.nn.softmax(attn, axis=-1)
    o = jnp.einsum("bhts,bhsd->bhtd", attn, v)
    return jnp.transpose(o, (0, 2, 1, 3)).reshape(B, T, C)


if __name__ == "__main__":
    B, T, C, n_heads = 2, 8, 32, 4

    key = jax.random.PRNGKey(0)
    kx, kq, kk, kv = jax.random.split(key, 4)
    x = jax.random.normal(kx, (B, T, C), dtype=jnp.float32)
    # nn.Linear-style weights (out_features, in_features), deterministic init.
    wq = jax.random.normal(kq, (C, C), dtype=jnp.float32) * (C ** -0.5)
    wk = jax.random.normal(kk, (C, C), dtype=jnp.float32) * (C ** -0.5)
    wv = jax.random.normal(kv, (C, C), dtype=jnp.float32) * (C ** -0.5)

    ref = _reference_forward(x, wq, wk, wv, n_heads)

    # Weight layout prep is hoisted out of the forward path (done once).
    w_q, w_kv = prepare_attention_weights(wq, wk, wv)              # f32 parity path
    out = attention_heads_forward(x, w_q, w_kv, n_heads)
    out = jax.block_until_ready(out)
    assert out.shape == (B, T, C)
    assert jnp.max(jnp.abs(out - ref)) < 2e-3, float(jnp.max(jnp.abs(out - ref)))

    # bf16 MXU-operand path (recommended on v6e/v7x): f32 accumulation and f32
    # softmax; loose tolerance reflects the intentional bf16 operand rounding.
    w_q_bf, w_kv_bf = prepare_attention_weights(wq, wk, wv, jnp.bfloat16)
    out_bf = attention_heads_forward(x, w_q_bf, w_kv_bf, n_heads)
    out_bf = jax.block_until_ready(out_bf)
    assert jnp.max(jnp.abs(out_bf - ref)) < 0.2, float(jnp.max(jnp.abs(out_bf - ref)))

    print("KERNEL_OK")
</pallas_src>

<mosaic_0001>
module attributes {stable_mosaic.version = 11 : i64} {
  func.func @_attn_kernel(%arg0: i32, %arg1: i32, %arg2: memref<1x8x32xf32, #tpu.memory_space<vmem>>, %arg3: memref<1x8x32xf32, #tpu.memory_space<vmem>>, %arg4: memref<32x32xf32, #tpu.memory_space<vmem>>, %arg5: memref<32x64xf32, #tpu.memory_space<vmem>>, %arg6: memref<1x8x32xf32, #tpu.memory_space<vmem>>, %arg7: memref<8x64xf32, #tpu.memory_space<vmem>>) attributes {dimension_semantics = [#tpu.dimension_semantics<parallel>, #tpu.dimension_semantics<arbitrary>], iteration_bounds = array<i64: 2, 1>, scalar_prefetch = 0 : i64, scratch_operands = 1 : i64, tpu.core_type = #tpu.core_type<tc>, window_params = [{transform_indices = @transform_0, window_bounds = array<i64: 1, 8, 32>}, {transform_indices = @transform_1, window_bounds = array<i64: 1, 8, 32>}, {pipeline_mode = #tpu.pipeline_mode<synchronous>, transform_indices = @transform_2, window_bounds = array<i64: 32, 32>}, {pipeline_mode = #tpu.pipeline_mode<synchronous>, transform_indices = @transform_3, window_bounds = array<i64: 32, 64>}, {transform_indices = @transform_4, window_bounds = array<i64: 1, 8, 32>}]} {
    %c0_i32 = arith.constant 0 : i32
    %0 = arith.cmpi eq, %arg1, %c0_i32 : i32
    %1 = arith.extui %0 : i1 to i32
    %c0_i32_0 = arith.constant 0 : i32
    %2 = arith.cmpi ne, %1, %c0_i32_0 : i32
    scf.if %2 {
      %c0_37 = arith.constant 0 : index
      %c0_38 = arith.constant 0 : index
      %c0_39 = arith.constant 0 : index
      %98 = vector.load %arg3[%c0_37, %c0_38, %c0_39] : memref<1x8x32xf32, #tpu.memory_space<vmem>>, vector<1x8x32xf32>
      %99 = vector.shape_cast %98 : vector<1x8x32xf32> to vector<8x32xf32>
      %c0_40 = arith.constant 0 : index
      %c0_41 = arith.constant 0 : index
      %100 = vector.load %arg5[%c0_40, %c0_41] : memref<32x64xf32, #tpu.memory_space<vmem>>, vector<32x64xf32>
      %cst_42 = arith.constant dense<0.000000e+00> : vector<8x64xf32>
      %101 = tpu.matmul %99, %100, %cst_42 {dimension_numbers = #tpu.dot_dimension_numbers<[1], [0], [0], [1], [0, 0, 1, 1], [], []>} : vector<8x32xf32>, vector<32x64xf32>, vector<8x64xf32> -> vector<8x64xf32>
      %c0_43 = arith.constant 0 : index
      %c0_44 = arith.constant 0 : index
      %102 = vector.load %arg7[%c0_43, %c0_44] : memref<8x64xf32, #tpu.memory_space<vmem>>, vector<8x64xf32>
      tpu.vector_store %arg7[%c0_43, %c0_44], %101 {strides = array<i32>} : memref<8x64xf32, #tpu.memory_space<vmem>>, vector<8x64xf32>,
    } else {
    }
    %c0 = arith.constant 0 : index
    %c0_1 = arith.constant 0 : index
    %c0_2 = arith.constant 0 : index
    %3 = vector.load %arg2[%c0, %c0_1, %c0_2] : memref<1x8x32xf32, #tpu.memory_space<vmem>>, vector<1x8x32xf32>
    %4 = vector.shape_cast %3 : vector<1x8x32xf32> to vector<8x32xf32>
    %c0_3 = arith.constant 0 : index
    %c0_4 = arith.constant 0 : index
    %5 = vector.load %arg4[%c0_3, %c0_4] : memref<32x32xf32, #tpu.memory_space<vmem>>, vector<32x32xf32>
    %cst = arith.constant dense<0.000000e+00> : vector<8x32xf32>
    %6 = tpu.matmul %4, %5, %cst {dimension_numbers = #tpu.dot_dimension_numbers<[1], [0], [0], [1], [0, 0, 1, 1], [], []>} : vector<8x32xf32>, vector<32x32xf32>, vector<8x32xf32> -> vector<8x32xf32>
    %cst_5 = arith.constant 0.353553385 : f32
    %7 = vector.broadcast %cst_5 : f32 to vector<8x32xf32>
    %8 = arith.mulf %6, %7 : vector<8x32xf32>
    %c0_6 = arith.constant 0 : index
    %c0_7 = arith.constant 0 : index
    %9 = vector.load %arg7[%c0_6, %c0_7] : memref<8x64xf32, #tpu.memory_space<vmem>>, vector<8x64xf32>
    %10 = vector.extract_strided_slice %9 {offsets = [0, 0], sizes = [8, 32], strides = [1, 1]} : vector<8x64xf32> to vector<8x32xf32>
    %11 = vector.extract_strided_slice %9 {offsets = [0, 32], sizes = [8, 32], strides = [1, 1]} : vector<8x64xf32> to vector<8x32xf32>
    %12 = tpu.iota {dimensions = array<i32: 0>} : vector<8x8xi32>
    %c8_i32 = arith.constant 8 : i32
    %13 = arith.muli %arg1, %c8_i32 : i32
    %14 = vector.broadcast %13 : i32 to vector<8x8xi32>
    %15 = arith.addi %12, %14 : vector<8x8xi32>
    %16 = tpu.iota {dimensions = array<i32: 1>} : vector<8x8xi32>
    %17 = arith.cmpi sgt, %16, %15 : vector<8x8xi32>
    %18 = vector.extract_strided_slice %8 {offsets = [0, 0], sizes = [8, 8], strides = [1, 1]} : vector<8x32xf32> to vector<8x8xf32>
    %19 = vector.extract_strided_slice %10 {offsets = [0, 0], sizes = [8, 8], strides = [1, 1]} : vector<8x32xf32> to vector<8x8xf32>
    %20 = vector.extract_strided_slice %11 {offsets = [0, 0], sizes = [8, 8], strides = [1, 1]} : vector<8x32xf32> to vector<8x8xf32>
    %cst_8 = arith.constant dense<0.000000e+00> : vector<8x8xf32>
    %21 = tpu.matmul %18, %19, %cst_8 {dimension_numbers = #tpu.dot_dimension_numbers<[1], [1], [0], [0], [0, 0, 1, 0], [], []>} : vector<8x8xf32>, vector<8x8xf32>, vector<8x8xf32> -> vector<8x8xf32>
    %cst_9 = arith.constant -1.000000e+30 : f32
    %22 = vector.broadcast %cst_9 : f32 to vector<8x8xf32>
    %23 = arith.select %17, %22, %21 : vector<8x8xi1>, vector<8x8xf32>
    %cst_10 = arith.constant dense<0xFF800000> : vector<8xf32>
    %24 = vector.multi_reduction <maximumf>, %23, %cst_10 [1] : vector<8x8xf32> to vector<8xf32>
    %25 = vector.shape_cast %24 : vector<8xf32> to vector<8x1xf32>
    %26 = vector.broadcast %25 : vector<8x1xf32> to vector<8x8xf32>
    %27 = arith.subf %23, %26 : vector<8x8xf32>
    %28 = math.exp %27 : vector<8x8xf32>
    %cst_11 = arith.constant dense<0.000000e+00> : vector<8xf32>
    %29 = vector.multi_reduction <add>, %28, %cst_11 [1] : vector<8x8xf32> to vector<8xf32>
    %30 = vector.shape_cast %29 : vector<8xf32> to vector<8x1xf32>
    %cst_12 = arith.constant dense<0.000000e+00> : vector<8x8xf32>
    %31 = tpu.matmul %28, %20, %cst_12 {dimension_numbers = #tpu.dot_dimension_numbers<[1], [0], [0], [1], [0, 0, 1, 1], [], []>} : vector<8x8xf32>, vector<8x8xf32>, vector<8x8xf32> -> vector<8x8xf32>
    %32 = tpu.reciprocal %30 : vector<8x1xf32> -> vector<8x1xf32>
    %33 = vector.broadcast %32 : vector<8x1xf32> to vector<8x8xf32>
    %34 = arith.mulf %31, %33 : vector<8x8xf32>
    %c0_13 = arith.constant 0 : index
    %c0_14 = arith.constant 0 : index
    %c0_15 = arith.constant 0 : index
    %35 = vector.load %arg6[%c0_13, %c0_14, %c0_15] : memref<1x8x32xf32, #tpu.memory_space<vmem>>, vector<1x8x8xf32>
    %36 = vector.shape_cast %35 : vector<1x8x8xf32> to vector<8x8xf32>
    %37 = vector.shape_cast %34 : vector<8x8xf32> to vector<1x8x8xf32>
    tpu.vector_store %arg6[%c0_13, %c0_14, %c0_15], %37 {strides = array<i32>} : memref<1x8x32xf32, #tpu.memory_space<vmem>>, vector<1x8x8xf32>,
    %38 = vector.extract_strided_slice %8 {offsets = [0, 8], sizes = [8, 8], strides = [1, 1]} : vector<8x32xf32> to vector<8x8xf32>
    %39 = vector.extract_strided_slice %10 {offsets = [0, 8], sizes = [8, 8], strides = [1, 1]} : vector<8x32xf32> to vector<8x8xf32>
    %40 = vector.extract_strided_slice %11 {offsets = [0, 8], sizes = [8, 8], strides = [1, 1]} : vector<8x32xf32> to vector<8x8xf32>
    %cst_16 = arith.constant dense<0.000000e+00> : vector<8x8xf32>
    %41 = tpu.matmul %38, %39, %cst_16 {dimension_numbers = #tpu.dot_dimension_numbers<[1], [1], [0], [0], [0, 0, 1, 0], [], []>} : vector<8x8xf32>, vector<8x8xf32>, vector<8x8xf32> -> vector<8x8xf32>
    %cst_17 = arith.constant -1.000000e+30 : f32
    %42 = vector.broadcast %cst_17 : f32 to vector<8x8xf32>
    %43 = arith.select %17, %42, %41 : vector<8x8xi1>, vector<8x8xf32>
    %cst_18 = arith.constant dense<0xFF800000> : vector<8xf32>
    %44 = vector.multi_reduction <maximumf>, %43, %cst_18 [1] : vector<8x8xf32> to vector<8xf32>
    %45 = vector.shape_cast %44 : vector<8xf32> to vector<8x1xf32>
    %46 = vector.broadcast %45 : vector<8x1xf32> to vector<8x8xf32>
    %47 = arith.subf %43, %46 : vector<8x8xf32>
    %48 = math.exp %47 : vector<8x8xf32>
    %cst_19 = arith.constant dense<0.000000e+00> : vector<8xf32>
    %49 = vector.multi_reduction <add>, %48, %cst_19 [1] : vector<8x8xf32> to vector<8xf32>
    %50 = vector.shape_cast %49 : vector<8xf32> to vector<8x1xf32>
    %cst_20 = arith.constant dense<0.000000e+00> : vector<8x8xf32>
    %51 = tpu.matmul %48, %40, %cst_20 {dimension_numbers = #tpu.dot_dimension_numbers<[1], [0], [0], [1], [0, 0, 1, 1], [], []>} : vector<8x8xf32>, vector<8x8xf32>, vector<8x8xf32> -> vector<8x8xf32>
    %52 = tpu.reciprocal %50 : vector<8x1xf32> -> vector<8x1xf32>
    %53 = vector.broadcast %52 : vector<8x1xf32> to vector<8x8xf32>
    %54 = arith.mulf %51, %53 : vector<8x8xf32>
    %c0_21 = arith.constant 0 : index
    %c0_22 = arith.constant 0 : index
    %c8 = arith.constant 8 : index
    %55 = vector.load %arg6[%c0_21, %c0_22, %c8] : memref<1x8x32xf32, #tpu.memory_space<vmem>>, vector<1x8x8xf32>
    %56 = vector.shape_cast %55 : vector<1x8x8xf32> to vector<8x8xf32>
    %57 = vector.shape_cast %54 : vector<8x8xf32> to vector<1x8x8xf32>
    tpu.vector_store %arg6[%c0_21, %c0_22, %c8], %57 {strides = array<i32>} : memref<1x8x32xf32, #tpu.memory_space<vmem>>, vector<1x8x8xf32>,
    %58 = vector.extract_strided_slice %8 {offsets = [0, 16], sizes = [8, 8], strides = [1, 1]} : vector<8x32xf32> to vector<8x8xf32>
    %59 = vector.extract_strided_slice %10 {offsets = [0, 16], sizes = [8, 8], strides = [1, 1]} : vector<8x32xf32> to vector<8x8xf32>
    %60 = vector.extract_strided_slice %11 {offsets = [0, 16], sizes = [8, 8], strides = [1, 1]} : vector<8x32xf32> to vector<8x8xf32>
    %cst_23 = arith.constant dense<0.000000e+00> : vector<8x8xf32>
    %61 = tpu.matmul %58, %59, %cst_23 {dimension_numbers = #tpu.dot_dimension_numbers<[1], [1], [0], [0], [0, 0, 1, 0], [], []>} : vector<8x8xf32>, vector<8x8xf32>, vector<8x8xf32> -> vector<8x8xf32>
    %cst_24 = arith.constant -1.000000e+30 : f32
    %62 = vector.broadcast %cst_24 : f32 to vector<8x8xf32>
    %63 = arith.select %17, %62, %61 : vector<8x8xi1>, vector<8x8xf32>
    %cst_25 = arith.constant dense<0xFF800000> : vector<8xf32>
    %64 = vector.multi_reduction <maximumf>, %63, %cst_25 [1] : vector<8x8xf32> to vector<8xf32>
    %65 = vector.shape_cast %64 : vector<8xf32> to vector<8x1xf32>
    %66 = vector.broadcast %65 : vector<8x1xf32> to vector<8x8xf32>
    %67 = arith.subf %63, %66 : vector<8x8xf32>
    %68 = math.exp %67 : vector<8x8xf32>
    %cst_26 = arith.constant dense<0.000000e+00> : vector<8xf32>
    %69 = vector.multi_reduction <add>, %68, %cst_26 [1] : vector<8x8xf32> to vector<8xf32>
    %70 = vector.shape_cast %69 : vector<8xf32> to vector<8x1xf32>
    %cst_27 = arith.constant dense<0.000000e+00> : vector<8x8xf32>
    %71 = tpu.matmul %68, %60, %cst_27 {dimension_numbers = #tpu.dot_dimension_numbers<[1], [0], [0], [1], [0, 0, 1, 1], [], []>} : vector<8x8xf32>, vector<8x8xf32>, vector<8x8xf32> -> vector<8x8xf32>
    %72 = tpu.reciprocal %70 : vector<8x1xf32> -> vector<8x1xf32>
    %73 = vector.broadcast %72 : vector<8x1xf32> to vector<8x8xf32>
    %74 = arith.mulf %71, %73 : vector<8x8xf32>
    %c0_28 = arith.constant 0 : index
    %c0_29 = arith.constant 0 : index
    %c16 = arith.constant 16 : index
    %75 = vector.load %arg6[%c0_28, %c0_29, %c16] : memref<1x8x32xf32, #tpu.memory_space<vmem>>, vector<1x8x8xf32>
    %76 = vector.shape_cast %75 : vector<1x8x8xf32> to vector<8x8xf32>
    %77 = vector.shape_cast %74 : vector<8x8xf32> to vector<1x8x8xf32>
    tpu.vector_store %arg6[%c0_28, %c0_29, %c16], %77 {strides = array<i32>} : memref<1x8x32xf32, #tpu.memory_space<vmem>>, vector<1x8x8xf32>,
    %78 = vector.extract_strided_slice %8 {offsets = [0, 24], sizes = [8, 8], strides = [1, 1]} : vector<8x32xf32> to vector<8x8xf32>
    %79 = vector.extract_strided_slice %10 {offsets = [0, 24], sizes = [8, 8], strides = [1, 1]} : vector<8x32xf32> to vector<8x8xf32>
    %80 = vector.extract_strided_slice %11 {offsets = [0, 24], sizes = [8, 8], strides = [1, 1]} : vector<8x32xf32> to vector<8x8xf32>
    %cst_30 = arith.constant dense<0.000000e+00> : vector<8x8xf32>
    %81 = tpu.matmul %78, %79, %cst_30 {dimension_numbers = #tpu.dot_dimension_numbers<[1], [1], [0], [0], [0, 0, 1, 0], [], []>} : vector<8x8xf32>, vector<8x8xf32>, vector<8x8xf32> -> vector<8x8xf32>
    %cst_31 = arith.constant -1.000000e+30 : f32
    %82 = vector.broadcast %cst_31 : f32 to vector<8x8xf32>
    %83 = arith.select %17, %82, %81 : vector<8x8xi1>, vector<8x8xf32>
    %cst_32 = arith.constant dense<0xFF800000> : vector<8xf32>
    %84 = vector.multi_reduction <maximumf>, %83, %cst_32 [1] : vector<8x8xf32> to vector<8xf32>
    %85 = vector.shape_cast %84 : vector<8xf32> to vector<8x1xf32>
    %86 = vector.broadcast %85 : vector<8x1xf32> to vector<8x8xf32>
    %87 = arith.subf %83, %86 : vector<8x8xf32>
    %88 = math.exp %87 : vector<8x8xf32>
    %cst_33 = arith.constant dense<0.000000e+00> : vector<8xf32>
    %89 = vector.multi_reduction <add>, %88, %cst_33 [1] : vector<8x8xf32> to vector<8xf32>
    %90 = vector.shape_cast %89 : vector<8xf32> to vector<8x1xf32>
    %cst_34 = arith.constant dense<0.000000e+00> : vector<8x8xf32>
    %91 = tpu.matmul %88, %80, %cst_34 {dimension_numbers = #tpu.dot_dimension_numbers<[1], [0], [0], [1], [0, 0, 1, 1], [], []>} : vector<8x8xf32>, vector<8x8xf32>, vector<8x8xf32> -> vector<8x8xf32>
    %92 = tpu.reciprocal %90 : vector<8x1xf32> -> vector<8x1xf32>
    %93 = vector.broadcast %92 : vector<8x1xf32> to vector<8x8xf32>
    %94 = arith.mulf %91, %93 : vector<8x8xf32>
    %c0_35 = arith.constant 0 : index
    %c0_36 = arith.constant 0 : index
    %c24 = arith.constant 24 : index
    %95 = vector.load %arg6[%c0_35, %c0_36, %c24] : memref<1x8x32xf32, #tpu.memory_space<vmem>>, vector<1x8x8xf32>
    %96 = vector.shape_cast %95 : vector<1x8x8xf32> to vector<8x8xf32>
    %97 = vector.shape_cast %94 : vector<8x8xf32> to vector<1x8x8xf32>
    tpu.vector_store %arg6[%c0_35, %c0_36, %c24], %97 {strides = array<i32>} : memref<1x8x32xf32, #tpu.memory_space<vmem>>, vector<1x8x8xf32>,
    return
  }
  func.func @transform_0(%arg0: i32, %arg1: i32) -> (i32, i32, i32) {
    %c0_i32 = arith.constant 0 : i32
    %c0_i32_0 = arith.constant 0 : i32
    return %arg0, %arg1, %c0_i32 : i32, i32, i32
  }
  func.func @transform_1(%arg0: i32, %arg1: i32) -> (i32, i32, i32) {
    %c0_i32 = arith.constant 0 : i32
    %c0_i32_0 = arith.constant 0 : i32
    %c0_i32_1 = arith.constant 0 : i32
    return %arg0, %c0_i32, %c0_i32_0 : i32, i32, i32
  }
  func.func @transform_2(%arg0: i32, %arg1: i32) -> (i32, i32) {
    %c0_i32 = arith.constant 0 : i32
    %c0_i32_0 = arith.constant 0 : i32
    %c0_i32_1 = arith.constant 0 : i32
    return %c0_i32, %c0_i32_0 : i32, i32
  }
  func.func @transform_3(%arg0: i32, %arg1: i32) -> (i32, i32) {
    %c0_i32 = arith.constant 0 : i32
    %c0_i32_0 = arith.constant 0 : i32
    %c0_i32_1 = arith.constant 0 : i32
    return %c0_i32, %c0_i32_0 : i32, i32
  }
  func.func @transform_4(%arg0: i32, %arg1: i32) -> (i32, i32, i32) {
    %c0_i32 = arith.constant 0 : i32
    %c0_i32_0 = arith.constant 0 : i32
    return %arg0, %arg1, %c0_i32 : i32, i32, i32
  }
}

</mosaic_0001>

<bundles_post_ra>
// kernel: tpu_custom_call.1
= control target key start
LH: loop header
LB: loop body
LE: loop exit
PB: predicated region body
PF: predicated region fallthrough
CT: control target
= control target key end

     0   :  { %s1452_s0 = inlined_call_operand.hbm [shape: f32[2,8,32], index: 0, kind: input, shape index: {}]   ;;  %s1453_s1 = inlined_call_operand.hbm [shape: f32[2,8,32], index: 1, kind: input, shape index: {}]   ;;  %s1454_s2 = inlined_call_operand.hbm [shape: f32[32,32], index: 2, kind: input, shape index: {}]   ;;  %s1455_s3 = inlined_call_operand.hbm [shape: f32[32,64], index: 3, kind: input, shape index: {}]   ;;  %s1456_s4 = inlined_call_operand.hbm [shape: f32[2,8,32], index: 4, kind: output, shape index: {}]  }
   0x1   :  { %1459 = sst [smem:[#allocation20_spill]] %s1454_s2 }
   0x2   :  { %1460 = sst [smem:[#allocation21_spill]] %s1455_s3 }
   0x3   :  { %9 = vsyncpa [#allocation4], 0 }
   0x4   :  { %11 = vsyncpa [#allocation4 + $0x1], 0 }
   0x5   :  { %12 = vsyncpa [#allocation7], 0 }
   0x6   :  { %14 = vsyncpa [#allocation7 + $0x1], 0 }
   0x7   :  { %15 = vsyncpa [#allocation10], 0 }
   0x8   :  { %16 = vsyncpa [#allocation5], 0 }
   0x9   :  { %18 = vsyncpa [#allocation5 + $0x1], 0  ;;  %s1256_s15 = smov 0   ;;  %s1258_s16 = smov 0  }
   0xa   :  { %s1260_s17 = smov 0   ;;  %s1262_s18 = smov 0  }
   0xb   :  { %s1264_s19 = smov 0   ;;  %s1266_s20 = smov 0  }
   0xc LB: > { %1461 = sst [smem:[#allocation17_spill]] %s1211_s19  ;;  %s1287_s21 = sadd.s32 4294967295, %s1215_s20   ;;  %s1215_s20 = sphi %s1266_s20, %s24_s20   ;;  %s1211_s19 = sphi %s1264_s19, %s1473_s19   ;;  %s1207_s18 = sphi %s1262_s18, %s1472_s18   ;;  %s1203_s17 = sphi %s1260_s17, %s1476_s17   ;;  %s1199_s16 = sphi %s1258_s16, %s1475_s16   ;;  %s1195_s15 = sphi %s1256_s15, %s1474_s15  }
   0xd   : > { %p853_p0 = scmp.ge.s32.totalorder %s1215_s20, 1  ;;  %p59_p1 = scmp.eq.s32.totalorder %s1287_s21, 0 }
   0xe   : > { %p165_p2 = scmp.lt.s32.totalorder %s1215_s20, 3  ;;  %s1462_s2 = sld [smem:[#allocation20_spill]] }
   0xf   : > { %s1217_s26 = smov [#allocation8]   ;;  %p856_p6 = scmp.ge.s32.totalorder %s1215_s20, 2 }
  0x10   : > { %p1295_p3 = pnand %p853_p0, %p165_p2  ;;  %s178_s27 = sshll.u32 %s1217_s26, 4  ;;  %s179_s27 = int_to_ptr.vmem [resolvable:$true] %s178_s27 }
  0x11   : > { %s1464_s3 = sld [smem:[#allocation21_spill]]  ;;  %s1218_s5 = smov 128  }
  0x12   : > { %p899_p4 = pneg %p1295_p3  ;;  %s1219_s6 = smov 8  }
  0x13   : > { %s1220_s7 = smov [#allocation9]   ;;  %s852_s9 = sadd.s32 4294967294, %s1215_s20  }
  0x14   : > { %s176_s24 = sshll.u32 %s1462_s2, 4  ;;  %p900_p5 = pnand %p899_p4, %p59_p1  ;;  %s177_s24 = int_to_ptr.hbm [resolvable:$true] %s176_s24 }
  0x15   : > { %s192_s8 = sshll.u32 %s1220_s7, 4  ;;  %s36_s10 = sadd.s32 1, %s1211_s19  ;;  %s193_s8 = int_to_ptr.vmem [resolvable:$true] %s192_s8 }
  0x16   : > { %902 = dma.hbm_to_vmem [thread:$0]  (!%p900_p5), %s177_s24, 512, %s179_s27, [#allocation7], %s1218_s5, %s1218_s5, %s1219_s6  }
  0x17   : > { %s190_s30 = sshll.u32 %s1464_s3, 4  ;;  %p38_p7 = scmp.ge.s32.totalorder %s36_s10, 2  ;;  %s191_s30 = int_to_ptr.hbm [resolvable:$true] %s190_s30 }
  0x18   : > { %905 = dma.hbm_to_vmem [thread:$0]  (!%p900_p5), %s191_s30, 512, %s193_s8, [#allocation10], %s1218_s5, %s1218_s5, %s1219_s6  }
  0x19   : > { %s45_s11 = sadd.s32 1, %s1203_s17  ;;  %p52_p8 = scmp.ne.s32.totalorder %s1203_s17, %s1199_s16 }
  0x1a   : > { %p53_p9 = scmp.eq.s32.totalorder %s1215_s20, 0  ;;  %s1478_s10 = smov (%p38_p7, %s36_s10), 0 }
  0x1b   : > { %1465 = sst [smem:[#allocation18_spill]] %s1478_s10  ;;  %p58_p11 = scmp.ne.s32.totalorder %s1199_s16, %s1195_s15 }
  0x1c   : > { %p1315_p10 = por %p53_p9, %p52_p8  ;;  %s40_s13 = ssub.s32 %s1211_s19, %s1478_s10 }
  0x1d   : > { %p152_p12 = scmp.eq.s32.totalorder %s1287_s21, 1  ;;  %p43_p13 = scmp.eq.s32.totalorder %s40_s13, 0 }
  0x1e   : > { %p1326_p0 = por %p59_p1, %p58_p11  ;;  %p158_p4 = scmp.eq.s32.totalorder %s852_s9, 1 }
  0x1f   : > { %p1330_p2 = por %p152_p12, %p52_p8  ;;  %p919_p7 = scmp.lt.s32.totalorder %s1215_s20, 2 }
  0x20   : > { %s1335_s23 = scalar_select %p43_p13, %s1203_s17, %s45_s11  }
  0x21   : > { %p1337_p5 = por %p158_p4, %p58_p11  ;;  %s206_s26 = sand.u32 1, %s1203_s17  }
  0x22   : > { %1469 = sst [smem:[#allocation19_spill]] %s1335_s23  ;;  %s858_s27 = sshll.u32 %s1211_s19, 3 }
  0x23   : > { %s857_s28 = sshll.u32 %s206_s26, 3  ;;  %s215_s5 = scalar_lea.hbm %s1452_s0, %s858_s27 }
  0x24   : > { %s217_s6 = sshll.u32 %s215_s5, 4  ;;  %s210_s7 = scalar_lea.vmem [#allocation3], %s857_s28  ;;  %s218_s6 = int_to_ptr.hbm [resolvable:$true] %s217_s6 }
  0x25   : > { %s219_s8 = sshll.u32 %s210_s7, 4  ;;  %p907_p8 = pnand %p919_p7, %p1315_p10  ;;  %s220_s8 = int_to_ptr.vmem [resolvable:$true] %s219_s8 }
  0x26   : > { %s234_s13 = scalar_lea.hbm %s1453_s1, %s858_s27  ;;  %s226_s2 = sand.u32 1, %s1215_s20  }
  0x27   : > { %s207_s3 = scalar_lea.sflag [#allocation4], %s206_s26  ;;  %s236_s10 = sshll.u32 %s234_s13, 4  ;;  %s237_s10 = int_to_ptr.hbm [resolvable:$true] %s236_s10 }
  0x28   : > { %909 = dma.hbm_to_vmem [thread:$0]  (!%p907_p8), %s218_s6, 128, %s220_s8, %s207_s3  }
  0x29   : > { %s230_s19 = scalar_lea.vmem [#allocation6], %s857_s28  ;;  %s227_s29 = scalar_lea.sflag [#allocation7], %s226_s2 }
  0x2a   : > { %s238_s23 = sshll.u32 %s230_s19, 4  ;;  %247 = sbr.rel (%p1295_p3) target bundleno = 1018 (0x3fa), region = 36  ;;  %s239_s23 = int_to_ptr.vmem [resolvable:$true] %s238_s23 }
  0x2b   : > { %912 = dma.hbm_to_vmem [thread:$0]  (!%p907_p8), %s237_s10, 128, %s239_s23, %s227_s29  }
  0x2c   : > { %s1356_s12 = sand.u32 (!%p1295_p3), 1, %s1199_s16  }
  0x2d   : > { %s1359_s27 = sshll.u32 (!%p1295_p3), %s1356_s12, 3  ;;  %s250_s3 = scalar_lea.sflag (!%p1295_p3), [#allocation4], %s1356_s12 }
  0x2e   : > { %s253_s26 = scalar_lea.vmem (!%p1295_p3), [#allocation3], %s1359_s27 }
  0x2f   : > { %1174 = dma.done.wait (%p1326_p0), %s250_s3, 128  }
  0x30   : > { %1176 = vsyncadd (%p1326_p0), %s250_s3, 4294967168  ;;  %s259_s2 = sand.u32 1, %s1287_s21   ;;  %s263_s25 = scalar_lea.vmem [#allocation6], %s1359_s27 }
  0x31   : > { %s260_s19 = scalar_lea.sflag [#allocation7], %s259_s2 }
  0x32   : > { %1178 = dma.done.wait (%p1326_p0), %s260_s19, 128  }
  0x33   : > { %1180 = vsyncadd (%p1326_p0), %s260_s19, 4294967168 }
  0x34   : > { %1182 = dma.done.wait (%p59_p1), [#allocation7], 512  }
  0x35   : > { %1184 = vsyncadd (%p59_p1), [#allocation7], 4294966784 }
  0x36   : > { %1186 = dma.done.wait (%p59_p1), [#allocation10], 512  }
  0x37   : > { %1188 = vsyncadd (%p59_p1), [#allocation10], 4294966784  ;;  %v312_v0 = vld [vmem:[#allocation9 + $0x18] sm:$0xff]  ;;  %v311_v1 = vld [vmem:[#allocation9 + $0x10] sm:$0xff]  ;;  %vm313_vm0 = vcmask 261120   ;;  %vm337_vm1 = vcmask 523264   ;;  %v370_v18 = vlaneseq }
  0x38   : > { %329 = vmatpush.msra.mxu0 %v312_v0  ;;  %v343_v2 = vld [vmem:[#allocation8 + $0x18] sm:$0xff]  ;;  %v310_v3 = vld [vmem:[#allocation9 + $0x8] sm:$0xff]  ;;  %v342_v4 = vld [vmem:[#allocation8 + $0x10] sm:$0xff]  ;;  %vm378_vm2 = vcmask 64512   ;;  %s1221_s21 = smov 104   ;;  %s1222_s10 = smov 120  }
  0x39   : > { %360 = vmatpush.msra.mxu1 %v343_v2  ;;  %v341_v5 = vld [vmem:[#allocation8 + $0x8] sm:$0xff]  ;;  %v309_v6 = vld [vmem:[#allocation9] sm:$0xff]  ;;  %v308_v7 = vld [vmem:[%s263_s25] sm:$0xff]  ;;  %s1223_s14 = smov 112   ;;  %v371_v19 = vshrl.u32 %v370_v18, 7  ;;  %v376_v20 = vand.u32 127, %v370_v18 }
  0x3a   : > { %330 = vmatpush.msra.mxu0 %v311_v1  ;;  %v340_v8 = vld [vmem:[#allocation8] sm:$0xff]  ;;  %s1224_s23 = smov 96   ;;  %s1225_s28 = smov 88  }
  0x3b   : > { %361 = vmatpush.msra.mxu1 %v342_v4  ;;  %v339_v9 = vld [vmem:[%s253_s26] sm:$0xff]  ;;  %vm377_vm3 = vcmp.gt.s32.totalorder %v376_v20, %v371_v19  ;;  %s1226_s30 = smov 80   ;;  %s1227_s5 = smov 72  }
  0x3c   : > { %331 = vmatpush.msra.mxu0 %v310_v3  ;;  %s1406_s6 = scalar_lea.vmem [#allocation11], %s1359_s27  ;;  %s1228_s7 = smov 16  }
  0x3d   : > { %362 = vmatpush.msra.mxu1 %v341_v5  ;;  %s1229_s8 = smov 8   ;;  %s1230_s9 = smov 24  }
  0x3e   : > { %332 = vmatpush.msra.mxu0 %v309_v6  ;;  %s882_s11 = sshll.u32 %s1207_s18, 3  ;;  %s726_s3 = sshll.u32 %s1406_s6, 4  ;;  %s727_s3 = int_to_ptr.vmem [resolvable:$true] %s726_s3 }
  0x3f   : > { %867 = vmatmul.msk.f32.vlgmr.msra.gmra.mxu0 %vm313_vm0, %v308_v7  ;;  %363 = vmatpush.msra.mxu1 %v340_v8  ;;  %s724_s27 = scalar_lea.hbm %s1456_s4, %s882_s11  ;;  %s713_s2 = scalar_lea.sflag [#allocation5], %s1356_s12 }
  0x40   : > { %868 = vmatmul.msk.f32.vlgmr.msra.gmra.mxu1 %vm313_vm0, %v339_v9  ;;  %s728_s26 = sshll.u32 %s724_s27, 4  ;;  %s729_s26 = int_to_ptr.hbm [resolvable:$true] %s728_s26 }
  0x41   : > { %s1135_s19 = sshra.s32 %s729_s26, 4  ;;  %s1136_s19 = int_to_ptr.hbm [resolvable:$true] %s1135_s19 }
  0x42   : > { %s1137_s18 = scalar_lea.hbm %s1136_s19, 8  ;;  %p1142_p10 = scmp.lt.s32.totalorder %s1136_s19, %s1456_s4 }
  0x43   : > { %p1138_p1 = scmp.ne.s32.totalorder %s1136_s19, %s1137_s18 }
  0x45   : > { %p1139_p3 = pnand %p1138_p1, %p1330_p2 }
  0x47   : > { %p1140_p9 = pneg %p1139_p3 }
  0xbc   : > { %v334_v10 = vpop.f32.mrf.mxu0 }
  0xbd   : > { %338 = vst.msk [vmem:[#allocation2] sm:$0xff] %vm337_vm1, %v334_v10  ;;  %v365_v11 = vpop.f32.mrf.mxu1 }
  0xbe   : > { %v368_v13 = vmul.f32 0.35355338, %v365_v11 }
  0xc4   : > { %v369_v12 = vld [vmem:[#allocation2] sm:$0xff] }
  0xc5   : > { %629 = vrot.lane.b32.xlu2 %v369_v12, %s1221_s21  ;;  %459 = vrot.lane.b32.xlu1 %v369_v12, %s1222_s10 }
  0xc6   : > { %869 = vmatpush.xpose.msk.msra.mxu2 %vm378_vm2, %v369_v12 }
  0xc9   : > { %870 = vmatmul.msk.f32.vlgmr.msra.gmra.mxu2 %vm378_vm2, %v368_v13 }
  0xcd   : > { %627 = vrot.lane.b32.xlu2 %v368_v13, %s1221_s21  ;;  %457 = vrot.lane.b32.xlu1 %v368_v13, %s1222_s10  ;;  %s1141_s10 = scalar_lea.hbm %s1456_s4, 16 }
  0xce   : > { %p1143_p11 = scmp.lt.s32.totalorder %s1141_s10, %s1137_s18 }
  0xd0   : > { %p1144_p12 = por %p1143_p11, %p1142_p10 }
  0xd2   : > { %p1145_p13 = pnand %p1144_p12, %p1140_p9 }
  0xd5   : > { %542 = vrot.lane.b32.xlu2 %v368_v13, %s1223_s14  ;;  %544 = vrot.lane.b32.xlu1 %v369_v12, %s1223_s14 }
 0x11f   : > { %v630_v14 = vpop.permute.xlu2 %629 }
 0x127   : > { %v628_v17 = vpop.permute.xlu2 %627 }
 0x12f   : > { %v543_v22 = vpop.permute.xlu2 %542 }
 0x137   : > { %v460_v15 = vpop.permute.xlu1 %459 }
 0x13f   : > { %v458_v16 = vpop.permute.xlu1 %457 }
 0x147   : > { %v545_v21 = vpop.permute.xlu1 %544 }
 0x148   : > { %875 = vmatpush.xpose.msk.msrb.mxu0 %vm378_vm2, %v545_v21 }
 0x14b   : > { %876 = vmatmul.msk.f32.vlgmr.msrb.gmra.mxu0 %vm378_vm2, %v543_v22 }
 0x14c   : > { %v402_v23 = vpop.f32.mrf.mxu2 }
 0x14d   : > { %v405_v24 = vsel %vm377_vm3, -1e+30, %v402_v23 }
 0x14e   : > { %v406_v25 = vsel %vm378_vm2, %v405_v24, -inf }
 0x14f   : > { %407 = vmax.xlane.f32.xlu0 %v406_v25 }
 0x163   : > { %415 = vrot.lane.b32.xlu0 %v369_v12, %s1224_s23 }
 0x16b   : > { %495 = vrot.lane.b32.xlu0 %v369_v12, %s1225_s28 }
 0x1c2   : > { %v408_v26 = vpop.xlane.xlu0 %407 }
 0x1c3   : > { %v409_v27 = vsub.f32 %v405_v24, %v408_v26 }
 0x1c5   : > { %v410_v31 = vmul.f32 1.442695, %v409_v27 }
 0x1c7   : > { %985 = vpow2.f32 %v410_v31 }
 0x1c8   : > { %v567_v28 = vpop.f32.mrf.mxu0 }
 0x1c9   : > { %v570_v29 = vsel %vm377_vm3, -1e+30, %v567_v28 }
 0x1ca   : > { %v571_v30 = vsel %vm378_vm2, %v570_v29, -inf }
 0x1cb   : > { %572 = vmax.xlane.f32.xlu0 %v571_v30 }
 0x1cd   : > { %v986_v33 = vpop.eup %985 }
 0x1ce   : > { %v412_v42 = vsel %vm378_vm2, %v986_v33, 0.0 }
 0x1d5   : > { %v416_v32 = vpop.permute.xlu0 %415 }
 0x1d6   : > { %436 = vmatpush.msra.mxu3 %v416_v32 }
 0x1d7   : > { %871 = vmatmul.msk.f32.vlgmr.msra.gmra.mxu3 %vm378_vm2, %v986_v33 }
 0x1d8   : > { %872 = vmatpush.xpose.msk.msrb.mxu3 %vm378_vm2, %v460_v15 }
 0x1dc   : > { %878 = vmatpush.xpose.msk.msra.mxu3 %vm378_vm2, %v630_v14 }
 0x1dd   : > { %v496_v34 = vpop.permute.xlu0 %495 }
 0x1de   : > { %516 = vmatpush.msrb.mxu2 %v496_v34 }
 0x1df   : > { %873 = vmatmul.msk.f32.vlgmr.msrb.gmra.mxu3 %vm378_vm2, %v458_v16 }
 0x1e7   : > { %879 = vmatmul.msk.f32.vlgmr.msra.gmra.mxu3 %vm378_vm2, %v628_v17 }
 0x23e   : > { %v573_v43 = vpop.xlane.xlu0 %572 }
 0x23f   : > { %v574_v46 = vsub.f32 %v570_v29, %v573_v43 }
 0x241   : > { %v575_v48 = vmul.f32 1.442695, %v574_v46 }
 0x25a   : > { %v438_v35 = vpop.f32.mrf.mxu3 }
 0x262   : > { %v482_v36 = vpop.f32.mrf.mxu3 }
 0x263   : > { %v485_v37 = vsel %vm377_vm3, -1e+30, %v482_v36 }
 0x264   : > { %v486_v38 = vsel %vm378_vm2, %v485_v37, -inf }
 0x265   : > { %487 = vmax.xlane.f32.xlu1 %v486_v38 }
 0x26a   : > { %v652_v39 = vpop.f32.mrf.mxu3 }
 0x26b   : > { %v655_v40 = vsel %vm377_vm3, -1e+30, %v652_v39 }
 0x26c   : > { %v656_v41 = vsel %vm378_vm2, %v655_v40, -inf }
 0x26d   : > { %657 = vmax.xlane.f32.xlu2 %v656_v41 }
 0x27e   : > { %580 = vrot.lane.b32.xlu1 %v369_v12, %s1226_s30 }
 0x285   : > { %665 = vrot.lane.b32.xlu2 %v369_v12, %s1227_s5 }
 0x2a8   : > { %413 = vadd.xlane.f32.xlu1 %v412_v42 }
 0x2d8   : > { %v488_v44 = vpop.xlane.xlu1 %487 }
 0x2d9   : > { %v489_v45 = vsub.f32 %v485_v37, %v488_v44 }
 0x2db   : > { %v490_v47 = vmul.f32 1.442695, %v489_v45 }
 0x2dd   : > { %987 = vpow2.f32 %v490_v47 }
 0x2de   : > { %989 = vpow2.f32 %v575_v48 }
 0x2e0   : > { %v658_v49 = vpop.xlane.xlu2 %657 }
 0x2e1   : > { %v659_v50 = vsub.f32 %v655_v40, %v658_v49 }
 0x2e3   : > { %v988_v51 = vpop.eup %987  ;;  %v660_v52 = vmul.f32 1.442695, %v659_v50 }
 0x2e4   : > { %874 = vmatmul.msk.f32.vlgmr.msrb.gmra.mxu2 %vm378_vm2, %v988_v51  ;;  %v492_v53 = vsel %vm378_vm2, %v988_v51, 0.0  ;;  %v990_v55 = vpop.eup %989 }
 0x2e5   : > { %991 = vpow2.f32 %v660_v52  ;;  %493 = vadd.xlane.f32.xlu0 %v492_v53  ;;  %v577_v58 = vsel %vm378_vm2, %v990_v55, 0.0 }
 0x2e8   : > { %v666_v54 = vpop.permute.xlu2 %665 }
 0x2e9   : > { %686 = vmatpush.msra.mxu2 %v666_v54 }
 0x2eb   : > { %v992_v56 = vpop.eup %991 }
 0x2ec   : > { %880 = vmatmul.msk.f32.vlgmr.msra.gmra.mxu2 %vm378_vm2, %v992_v56  ;;  %v662_v57 = vsel %vm378_vm2, %v992_v56, 0.0 }
 0x2ed   : > { %663 = vadd.xlane.f32.xlu2 %v662_v57  ;;  %578 = vadd.xlane.f32.xlu0 %v577_v58 }
 0x2f0   : > { %v581_v59 = vpop.permute.xlu1 %580 }
 0x2f1   : > { %601 = vmatpush.msrb.mxu1 %v581_v59 }
 0x2f2   : > { %877 = vmatmul.msk.f32.vlgmr.msrb.gmra.mxu1 %vm378_vm2, %v990_v55 }
 0x31b   : > { %v414_v60 = vpop.xlane.xlu1 %413 }
 0x31c   : > { %993 = vrcp.f32 %v414_v60  ;;  %v452_v0 = vand.u32 2147483648, %v414_v60  ;;  %v450_v2 = vand.u32 2147483647, %v414_v60  ;;  %vm446_vm5 = vweird.f32 %v414_v60 }
 0x31e   : > { %v453_v4 = vor.u32 1.1754944e-38, %v452_v0  ;;  %vm451_vm7 = vcmp.eq.f32.partialorder %v450_v2, 8.507059e+37 }
 0x322   : > { %v994_v61 = vpop.eup %993 }
 0x323   : > { %v442_v62 = vmul.f32 %v994_v61, %v414_v60  ;;  %vm447_vm4 = vweird.f32 %v994_v61 }
 0x324   : > { %vm448_vm6 = vmor %vm446_vm5, %vm447_vm4  ;;  %vm540_vm4 = vcmask 130112   ;;  %vm625_vm5 = vcmask 195712  }
 0x325   : > { %v443_v63 = vsub.f32 1.0, %v442_v62 }
 0x327   : > { %v444_v1 = vmul.f32 %v994_v61, %v443_v63 }
 0x329   : > { %v445_v3 = vadd.f32 %v994_v61, %v444_v1 }
 0x32b   : > { %v449_v5 = vsel %vm448_vm6, %v994_v61, %v445_v3  ;;  %vm710_vm6 = vcmask 261312  }
 0x32c   : > { %v454_v6 = vsel %vm451_vm7, %v453_v4, %v449_v5 }
 0x32d   : > { %v455_v7 = vmul.f32 %v454_v6, %v438_v35 }
 0x32f   : > { %456 = vst.msk [vmem:[%s1406_s6] sm:$0xff] %vm378_vm2, %v455_v7 }
 0x358   : > { %v494_v8 = vpop.xlane.xlu0 %493 }
 0x359   : > { %995 = vrcp.f32 %v494_v8  ;;  %v532_v28 = vand.u32 2147483648, %v494_v8  ;;  %vm526_vm13 = vweird.f32 %v494_v8  ;;  %v530_v31 = vand.u32 2147483647, %v494_v8 }
 0x35b   : > { %v533_v35 = vor.u32 1.1754944e-38, %v532_v28  ;;  %vm531_vm15 = vcmp.eq.f32.partialorder %v530_v31, 8.507059e+37 }
 0x35f   : > { %v996_v11 = vpop.eup %995 }
 0x360   : > { %v579_v9 = vpop.xlane.xlu0 %578  ;;  %v664_v10 = vpop.xlane.xlu2 %663  ;;  %v522_v12 = vmul.f32 %v996_v11, %v494_v8  ;;  %vm527_vm10 = vweird.f32 %v996_v11 }
 0x361   : > { %997 = vrcp.f32 %v579_v9  ;;  %v615_v18 = vand.u32 2147483647, %v579_v9  ;;  %v617_v19 = vand.u32 2147483648, %v579_v9  ;;  %vm611_vm9 = vweird.f32 %v579_v9  ;;  %vm528_vm14 = vmor %vm526_vm13, %vm527_vm10 }
 0x362   : > { %999 = vrcp.f32 %v664_v10  ;;  %v523_v14 = vsub.f32 1.0, %v522_v12  ;;  %v702_v39 = vand.u32 2147483648, %v664_v10  ;;  %vm696_vm1 = vweird.f32 %v664_v10 }
 0x363   : > { %v618_v24 = vor.u32 1.1754944e-38, %v617_v19  ;;  %vm616_vm12 = vcmp.eq.f32.partialorder %v615_v18, 8.507059e+37  ;;  %v700_v41 = vand.u32 2147483647, %v664_v10 }
 0x364   : > { %v524_v21 = vmul.f32 %v996_v11, %v523_v14  ;;  %v703_v43 = vor.u32 1.1754944e-38, %v702_v39 }
 0x365   : > { %vm701_vm3 = vcmp.eq.f32.partialorder %v700_v41, 8.507059e+37 }
 0x366   : > { %v525_v26 = vadd.f32 %v996_v11, %v524_v21 }
 0x367   : > { %v998_v13 = vpop.eup %997  ;;  %v518_v36 = vpop.f32.mrf.mxu2 }
 0x368   : > { %v607_v15 = vmul.f32 %v998_v13, %v579_v9  ;;  %v1000_v16 = vpop.eup %999  ;;  %vm612_vm8 = vweird.f32 %v998_v13  ;;  %v529_v34 = vsel %vm528_vm14, %v996_v11, %v525_v26 }
 0x369   : > { %v692_v20 = vmul.f32 %v1000_v16, %v664_v10  ;;  %vm613_vm11 = vmor %vm611_vm9, %vm612_vm8  ;;  %v534_v37 = vsel %vm531_vm15, %v533_v35, %v529_v34  ;;  %vm697_vm0 = vweird.f32 %v1000_v16 }
 0x36a   : > { %v608_v17 = vsub.f32 1.0, %v607_v15  ;;  %v535_v40 = vmul.f32 %v534_v37, %v518_v36  ;;  %vm698_vm2 = vmor %vm696_vm1, %vm697_vm0 }
 0x36b   : > { %v693_v25 = vsub.f32 1.0, %v692_v20 }
 0x36c   : > { %v609_v22 = vmul.f32 %v998_v13, %v608_v17 }
 0x36d   : > { %v694_v33 = vmul.f32 %v1000_v16, %v693_v25 }
 0x36e   : > { %v610_v23 = vadd.f32 %v998_v13, %v609_v22 }
 0x36f   : > { %v603_v29 = vpop.f32.mrf.mxu1  ;;  %v695_v38 = vadd.f32 %v1000_v16, %v694_v33  ;;  %v688_v45 = vpop.f32.mrf.mxu2 }
 0x370   : > { %v614_v27 = vsel %vm613_vm11, %v998_v13, %v610_v23 }
 0x371   : > { %v619_v30 = vsel %vm616_vm12, %v618_v24, %v614_v27  ;;  %v699_v42 = vsel %vm698_vm2, %v1000_v16, %v695_v38 }
 0x372   : > { %v620_v32 = vmul.f32 %v619_v30, %v603_v29  ;;  %v704_v44 = vsel %vm701_vm3, %v703_v43, %v699_v42 }
 0x373   : > { %v705_v46 = vmul.f32 %v704_v44, %v688_v45 }
 0x374   : > { %622 = vrot.lane.b32.xlu0 %v620_v32, %s1228_s7 }
 0x37c   : > { %537 = vrot.lane.b32.xlu0 %v535_v40, %s1229_s8 }
 0x384   : > { %707 = vrot.lane.b32.xlu0 %v705_v46, %s1230_s9 }
 0x3e6   : > { %v623_v47 = vpop.permute.xlu0 %622 }
 0x3ee   : > { %v538_v48 = vpop.permute.xlu0 %537 }
 0x3ef   : > { %541 = vst.msk [vmem:[%s1406_s6] sm:$0xff] %vm540_vm4, %v538_v48 }
 0x3f0   : > { %626 = vst.msk [vmem:[%s1406_s6] sm:$0xff] %vm625_vm5, %v623_v47 }
 0x3f6   : > { %v708_v49 = vpop.permute.xlu0 %707 }
 0x3f7   : > { %711 = vst.msk [vmem:[%s1406_s6] sm:$0xff] %vm710_vm6, %v708_v49 }
 0x3f8   : > { %1148 = shalt.err (!%p1145_p13)
}
 0x3f9   : > { %897 = dma.vmem_to_hbm [thread:$0]  (%p1330_p2), %s727_s3, 128, %s729_s26, %s713_s2  }
 0x3fa PF: > { %s740_s12 = sand.u32 1, %s1195_s15   ;;  %p914_p0 = pnand %p856_p6, %p1337_p5 }
 0x3fb   : > { %s741_s28 = scalar_lea.sflag [#allocation5], %s740_s12 }
 0x3fc   : > { %p915_p4 = pneg %p914_p0 }
 0x3fe   : > { %1190 = dma.done.wait (%p915_p4), %s741_s28, 128  }
 0x3ff   : > { %1192 = vsyncadd (%p915_p4), %s741_s28, 4294967168  ;;  %s24_s20 = sadd.s32 1, %s1215_s20   ;;  %s1471_s30 = sld [smem:[#allocation19_spill]] }
 0x400   : > { %p21_p7 = scmp.ge.s32.totalorder %s24_s20, 4   ;;  %s1472_s18 = sld [smem:[#allocation17_spill]] }
 0x401   : > { %s1473_s19 = sld [smem:[#allocation18_spill]]  ;;  %s1474_s15 = smov %s1199_s16 }
 0x402   : > { %s1475_s16 = smov %s1203_s17  ;;  %23 = sbr.rel (!%p21_p7) target bundleno = 12 (0xc), region = 106 }
 0x405   : > { %s1476_s17 = smov %s1471_s30 }
 0x407   :  { %747 = vsyncpa [#allocation4], 1 }
 0x408   :  { %749 = vsyncpa [#allocation4 + $0x1], 1 }
 0x409   :  { %750 = vsyncpa [#allocation7], 1 }
 0x40a   :  { %752 = vsyncpa [#allocation7 + $0x1], 1 }
 0x40b   :  { %753 = vsyncpa [#allocation10], 1 }
 0x40c   :  { %754 = vsyncpa [#allocation5], 1 }
 0x40d   :  { %756 = vsyncpa [#allocation5 + $0x1], 1 }

</bundles_post_ra>
